<compile_context>
chip_gen: v6e
topology: v6e:2x2x1
jax: 0.10.0
libtpu: 0.0.40
codegen_flags: <defaults>
</compile_context>

<pallas_src>
import math
import jax
import jax.numpy as jnp
from jax import lax
from jax.experimental import pallas as pl
from jax.experimental.pallas import tpu as pltpu


# ---------------------------------------------------------------------------
# Small helpers
# ---------------------------------------------------------------------------
def _round_up(x, m):
    return ((x + m - 1) // m) * m


def _pad_to(a, shape):
    pads = [(0, s - d) for d, s in zip(a.shape, shape)]
    if any(p[1] for p in pads):
        a = jnp.pad(a, pads)
    return a


def _vmem_capacity():
    try:
        cap = int(pltpu.get_tpu_info().vmem_capacity_bytes)
        if cap > 0:
            return cap
    except Exception:
        pass
    return 64 * 1024 * 1024  # conservative default (v7x per-TC VMEM)


def _select_tiles(n_pad, k_pad, vmem_fn, budget):
    """Pick (tm, tk).  Prefer large tm but keep >=2 row tiles (v7x megacore),
    and prefer tk == K (weights resident, one DMA per call)."""
    tm_cands = [c for c in (512, 256, 128) if c < n_pad] or [n_pad]
    tm_cands += [c for c in (64, 32, 16) if c < n_pad]
    tk_cands = [k_pad] + [c for c in (512, 256, 128) if c < k_pad]
    for tm in tm_cands:
        if n_pad % tm:
            continue
        for tk in tk_cands:
            if k_pad % tk:
                continue
            if vmem_fn(tm, tk) <= budget:
                return tm, tk
    return None


# ---------------------------------------------------------------------------
# Kernel 1:  y = x @ W + b  (+ epilogue), K-accumulated in VMEM f32
# ---------------------------------------------------------------------------
def _make_linear_kernel(epilogue):
    assert epilogue in ("none", "relu", "l2norm")

    def kernel(x_ref, w_ref, b_ref, o_ref, acc_ref):
        k = pl.program_id(1)

        @pl.when(k == 0)
        def _init():
            acc_ref[...] = jnp.zeros_like(acc_ref)

        acc_ref[...] += jnp.dot(x_ref[...], w_ref[...],
                                preferred_element_type=jnp.float32)

        @pl.when(k == pl.num_programs(1) - 1)
        def _finalize():
            y = acc_ref[...] + b_ref[...]
            if epilogue == "relu":
                y = jnp.maximum(y, 0.0)
            elif epilogue == "l2norm":
                # F.normalize(x, p=2, dim=1): x / max(||x||, 1e-12)
                sumsq = jnp.sum(y * y, axis=-1, keepdims=True)
                y = y * lax.rsqrt(jnp.maximum(sumsq, 1e-24))
            o_ref[...] = y.astype(o_ref.dtype)

    return kernel


def pallas_linear(x, w, b=None, *, epilogue="none", tile_m=None, tile_k=None):
    """y = x @ w + b with fused epilogue.  bf16 MXU operands, f32 accumulate."""
    N, K = x.shape
    Kw, C = w.shape
    assert K == Kw, (x.shape, w.shape)
    if b is None:
        b = jnp.zeros((C,), dtype=jnp.float32)

    n_pad = _round_up(N, 128)
    k_pad = _round_up(K, 128)
    c_pad = _round_up(C, 128)

    phys = _vmem_capacity()
    budget = int(0.70 * phys)

    def vmem_fn(tm, tk):
        return (2 * tm * tk * 2            # x tiles (bf16, double-buffered)
                + 2 * tk * c_pad * 2       # W tiles
                + 2 * c_pad * 4            # bias
                + 2 * tm * c_pad * 4       # output tiles (f32)
                + tm * c_pad * 4)          # acc scratch

    tiles = _select_tiles(n_pad, k_pad, vmem_fn, budget)
    if tiles is None:
        # TODO(synk): add an output-feature (C) tiling grid axis for huge C.
        raise ValueError("pallas_linear: C too large for VMEM budget")
    tm, tk = tiles
    if tile_m is not None:
        tm = int(tile_m)
        n_pad = _round_up(N, tm)
    if tile_k is not None:
        tk = int(tile_k)
        k_pad = _round_up(K, tk)
    n_m, n_k = n_pad // tm, k_pad // tk

    x_p = _pad_to(x.astype(jnp.bfloat16), (n_pad, k_pad))
    w_p = _pad_to(w.astype(jnp.bfloat16), (k_pad, c_pad))
    b_p = _pad_to(b.astype(jnp.float32).reshape(1, C), (1, c_pad))

    vmem_limit = min(int(0.75 * phys),
                     max(vmem_fn(tm, tk) + (4 << 20), 16 << 20))

    # W is re-streamed once per row tile only when K is tiled (n_k > 1).
    w_bytes = (n_m if n_k > 1 else 1) * k_pad * c_pad * 2
    cost = pl.CostEstimate(
        flops=2 * n_pad * k_pad * c_pad,
        transcendentals=0,
        bytes_accessed=(n_pad * k_pad * 2 + w_bytes + c_pad * 4
                        + n_pad * c_pad * 4),
    )

    # TODO(synk): on v5e with n_k > 1, pipeline_mode=pl.Buffered(3) on the x
    # spec can hide exposed DMA latency (only if the VMEM budget still passes).
    out = pl.pallas_call(
        _make_linear_kernel(epilogue),
        out_shape=jax.ShapeDtypeStruct((n_pad, c_pad), jnp.float32),
        grid_spec=pltpu.PrefetchScalarGridSpec(
            num_scalar_prefetch=0,
            grid=(n_m, n_k),
            in_specs=[
                pl.BlockSpec((tm, tk), lambda i, k: (i, k)),     # x row tile
                pl.BlockSpec((tk, c_pad), lambda i, k: (k, 0)),  # W (resident when n_k==1)
                pl.BlockSpec((1, c_pad), lambda i, k: (0, 0)),   # bias (resident)
            ],
            out_specs=pl.BlockSpec((tm, c_pad), lambda i, k: (i, 0)),  # lane-dense
            scratch_shapes=[pltpu.VMEM((tm, c_pad), jnp.float32)],
        ),
        compiler_params=pltpu.CompilerParams(
            dimension_semantics=("parallel", "arbitrary"),
            vmem_limit_bytes=vmem_limit,
        ),
        cost_estimate=cost,
    )(x_p, w_p, b_p)
    return out[:N, :C]


# ---------------------------------------------------------------------------
# Kernel 2 (fused):  y = f2( f1(X @ W1 + b1) @ W2 + b2 )
#   gcn layer : X=A, W1=x_feats, b1=0, f1=none, f2=relu/none
#   sgc 'mlp' : X=x, f1=relu, f2=none/l2norm
# W2 / b2 / b1 stay resident in VMEM; intermediate never touches HBM.
# ---------------------------------------------------------------------------
def _make_fused_kernel(mid_act, epilogue):
    assert mid_act in ("none", "relu")
    assert epilogue in ("none", "relu", "l2norm")

    def kernel(x_ref, w1_ref, b1_ref, w2_ref, b2_ref, o_ref, acc_ref):
        k = pl.program_id(1)

        @pl.when(k == 0)
        def _init():
            acc_ref[...] = jnp.zeros_like(acc_ref)

        acc_ref[...] += jnp.dot(x_ref[...], w1_ref[...],
                                preferred_element_type=jnp.float32)

        @pl.when(k == pl.num_programs(1) - 1)
        def _finalize():
            h = acc_ref[...] + b1_ref[...]
            if mid_act == "relu":
                h = jnp.maximum(h, 0.0)
            y = jnp.dot(h.astype(jnp.bfloat16), w2_ref[...],
                        preferred_element_type=jnp.float32) + b2_ref[...]
            if epilogue == "relu":
                y = jnp.maximum(y, 0.0)
            elif epilogue == "l2norm":
                sumsq = jnp.sum(y * y, axis=-1, keepdims=True)
                y = y * lax.rsqrt(jnp.maximum(sumsq, 1e-24))
            o_ref[...] = y.astype(o_ref.dtype)

    return kernel


def pallas_linear2(x, w1, b1, w2, b2, *, mid_act="none", epilogue="none"):
    N, K = x.shape
    Kw, H = w1.shape
    Hw, C = w2.shape
    assert K == Kw and H == Hw, (x.shape, w1.shape, w2.shape)
    if b1 is None:
        b1 = jnp.zeros((H,), dtype=jnp.float32)
    if b2 is None:
        b2 = jnp.zeros((C,), dtype=jnp.float32)

    n_pad = _round_up(N, 128)
    k_pad = _round_up(K, 128)
    h_pad = _round_up(H, 128)
    c_pad = _round_up(C, 128)

    phys = _vmem_capacity()
    budget = int(0.70 * phys)

    def vmem_fn(tm, tk):
        return (2 * tm * tk * 2            # X tiles (bf16)
                + 2 * tk * h_pad * 2       # W1 tiles
                + 2 * h_pad * 4            # b1
                + 2 * h_pad * c_pad * 2    # W2 (resident)
                + 2 * c_pad * 4            # b2
                + 2 * tm * c_pad * 4       # output tiles (f32)
                + tm * h_pad * 4)          # acc scratch

    tiles = _select_tiles(n_pad, k_pad, vmem_fn, budget)
    if tiles is None:
        # Fall back to the un-fused two-kernel path (intermediate via HBM).
        h = pallas_linear(x, w1, b1,
                          epilogue=("relu" if mid_act == "relu" else "none"))
        return pallas_linear(h, w2, b2, epilogue=epilogue)
    tm, tk = tiles
    n_m, n_k = n_pad // tm, k_pad // tk

    x_p = _pad_to(x.astype(jnp.bfloat16), (n_pad, k_pad))
    w1_p = _pad_to(w1.astype(jnp.bfloat16), (k_pad, h_pad))
    b1_p = _pad_to(b1.astype(jnp.float32).reshape(1, H), (1, h_pad))
    w2_p = _pad_to(w2.astype(jnp.bfloat16), (h_pad, c_pad))
    b2_p = _pad_to(b2.astype(jnp.float32).reshape(1, C), (1, c_pad))

    vmem_limit = min(int(0.75 * phys),
                     max(vmem_fn(tm, tk) + (4 << 20), 16 << 20))

    w1_bytes = (n_m if n_k > 1 else 1) * k_pad * h_pad * 2
    cost = pl.CostEstimate(
        flops=2 * n_pad * k_pad * h_pad + 2 * n_pad * h_pad * c_pad,
        transcendentals=0,
        bytes_accessed=(n_pad * k_pad * 2 + w1_bytes + h_pad * 4
                        + h_pad * c_pad * 2 + c_pad * 4 + n_pad * c_pad * 4),
    )

    out = pl.pallas_call(
        _make_fused_kernel(mid_act, epilogue),
        out_shape=jax.ShapeDtypeStruct((n_pad, c_pad), jnp.float32),
        grid_spec=pltpu.PrefetchScalarGridSpec(
            num_scalar_prefetch=0,
            grid=(n_m, n_k),
            in_specs=[
                pl.BlockSpec((tm, tk), lambda i, k: (i, k)),         # X row tile
                pl.BlockSpec((tk, h_pad), lambda i, k: (k, 0)),      # W1
                pl.BlockSpec((1, h_pad), lambda i, k: (0, 0)),       # b1 (resident)
                pl.BlockSpec((h_pad, c_pad), lambda i, k: (0, 0)),   # W2 (resident)
                pl.BlockSpec((1, c_pad), lambda i, k: (0, 0)),       # b2 (resident)
            ],
            out_specs=pl.BlockSpec((tm, c_pad), lambda i, k: (i, 0)),
            scratch_shapes=[pltpu.VMEM((tm, h_pad), jnp.float32)],
        ),
        compiler_params=pltpu.CompilerParams(
            dimension_semantics=("parallel", "arbitrary"),
            vmem_limit_bytes=vmem_limit,
        ),
        cost_estimate=cost,
    )(x_p, w1_p, b1_p, w2_p, b2_p)
    return out[:N, :C]


# ---------------------------------------------------------------------------
# Parameter init helpers (deterministic)
# ---------------------------------------------------------------------------
def _linear_init(key, fan_in, fan_out, dtype=jnp.float32):
    # nn.Linear default init; weight stored (in, out) -> no per-call transpose.
    kw, kb = jax.random.split(key)
    bound = 1.0 / math.sqrt(fan_in)
    W = jax.random.uniform(kw, (fan_in, fan_out), minval=-bound, maxval=bound,
                           dtype=dtype)
    b = jax.random.uniform(kb, (fan_out,), minval=-bound, maxval=bound,
                           dtype=dtype)
    return W, b


def _glorot_init(key, fan_in, fan_out, dtype=jnp.float32):
    limit = math.sqrt(6.0 / (fan_in + fan_out))
    W = jax.random.uniform(key, (fan_in, fan_out), minval=-limit, maxval=limit,
                           dtype=dtype)
    b = jnp.zeros((fan_out,), dtype=dtype)
    return W, b


# ---------------------------------------------------------------------------
# top_agg (JAX / Pallas port)
# ---------------------------------------------------------------------------
class TopAgg:
    def __init__(self, A_norm, alpha, hop, emb_dim, hidden_dim, key,
                 linear_prop="sgc", linear_trans="lin", norm=None):
        self.linear_prop = linear_prop
        self.linear_trans = linear_trans
        self.norm = norm
        N = A_norm.shape[0]

        if linear_prop == "sgc":
            # top_filter = alpha * A_norm @ top_filter + I, iterated `hop` times.
            I = jnp.eye(N, dtype=A_norm.dtype)
            tf = jnp.eye(N, dtype=A_norm.dtype)
            for _ in range(hop):
                tf = alpha * (A_norm @ tf) + I
            self.top_filter = tf
            if linear_trans == "lin":
                self.fc = [_linear_init(key, emb_dim, emb_dim)]
            elif linear_trans == "mlp":
                k1, k2 = jax.random.split(key)
                self.fc = [_linear_init(k1, emb_dim, hidden_dim),
                           _linear_init(k2, hidden_dim, emb_dim)]
            else:
                raise NotImplementedError
        elif linear_prop == "gcn":
            assert hop >= 2
            self.top_filter = A_norm
            sizes = ([(emb_dim, hidden_dim)]
                     + [(hidden_dim, hidden_dim)] * (hop - 2)
                     + [(hidden_dim, emb_dim)])
            keys = jax.random.split(key, len(sizes))
            self.lins = [_glorot_init(kk, fi, fo)
                         for kk, (fi, fo) in zip(keys, sizes)]
        else:
            raise NotImplementedError

    def agg(self, x):
        # top_filter @ x  via the tiled Pallas matmul (zero bias).
        return pallas_linear(self.top_filter, x, epilogue="none")

    def __call__(self, x):
        if self.linear_prop == "sgc":
            epi = "l2norm" if self.norm == "l2-norm" else "none"
            if self.linear_trans == "lin":
                W, b = self.fc[0]
                x = pallas_linear(x, W, b, epilogue=epi)
            else:  # 'mlp': Linear -> ReLU -> Linear fused in one pallas_call
                (W1, b1), (W2, b2) = self.fc
                x = pallas_linear2(x, W1, b1, W2, b2,
                                   mid_act="relu", epilogue=epi)
        elif self.linear_prop == "gcn":
            # One fused pallas_call per layer: relu((A @ x) @ W + b)
            for (W, b) in self.lins[:-1]:
                x = pallas_linear2(self.top_filter, x, None, W, b,
                                   mid_act="none", epilogue="relu")
            W, b = self.lins[-1]
            x = pallas_linear2(self.top_filter, x, None, W, b,
                               mid_act="none", epilogue="none")
        return x


# ---------------------------------------------------------------------------
# Main
# ---------------------------------------------------------------------------
if __name__ == "__main__":
    key = jax.random.PRNGKey(0)
    kA, kx, k1, k2, k3 = jax.random.split(key, 5)

    node_num, emb_dim, hidden_dim = 256, 256, 128
    A = jax.random.uniform(kA, (node_num, node_num), dtype=jnp.float32)
    A_norm = A / jnp.sum(A, axis=1, keepdims=True)          # row-stochastic
    x = jax.random.normal(kx, (node_num, emb_dim), dtype=jnp.float32)

    RTOL, ATOL = 2e-2, 2e-2

    # --- sgc / lin / l2-norm -------------------------------------------------
    m_sgc = TopAgg(A_norm, alpha=0.5, hop=2, emb_dim=emb_dim,
                   hidden_dim=hidden_dim, key=k1,
                   linear_prop="sgc", linear_trans="lin", norm="l2-norm")
    out_sgc = jax.block_until_ready(m_sgc(x))
    W0, b0 = m_sgc.fc[0]
    ref = jnp.dot(x, W0, preferred_element_type=jnp.float32) + b0
    ref = ref / jnp.maximum(jnp.linalg.norm(ref, axis=1, keepdims=True), 1e-12)
    assert out_sgc.shape == (node_num, emb_dim)
    assert jnp.allclose(out_sgc, ref, rtol=RTOL, atol=ATOL)
    assert jnp.allclose(jnp.linalg.norm(out_sgc, axis=1), 1.0, atol=1e-2)

    # --- explicit multi-k tiling (exercise the accumulator / pipelining) -----
    y_tiled = pallas_linear(x, W0, b0, epilogue="none", tile_m=64, tile_k=128)
    ref_lin = jnp.dot(x, W0, preferred_element_type=jnp.float32) + b0
    assert jnp.allclose(y_tiled, ref_lin, rtol=RTOL, atol=ATOL)

    # --- agg (top_filter @ x) -------------------------------------------------
    agg_out = jax.block_until_ready(m_sgc.agg(x))
    assert jnp.allclose(agg_out, m_sgc.top_filter @ x, rtol=RTOL, atol=ATOL)

    # --- sgc / mlp (fused Linear->ReLU->Linear) -------------------------------
    m_mlp = TopAgg(A_norm, 0.5, 2, emb_dim, hidden_dim, k2,
                   linear_prop="sgc", linear_trans="mlp", norm=None)
    out_mlp = jax.block_until_ready(m_mlp(x))
    (W1, b1), (W2, b2) = m_mlp.fc
    ref_mlp = jnp.maximum(
        jnp.dot(x, W1, preferred_element_type=jnp.float32) + b1, 0.0)
    ref_mlp = jnp.dot(ref_mlp, W2, preferred_element_type=jnp.float32) + b2
    assert out_mlp.shape == (node_num, emb_dim)
    assert jnp.allclose(out_mlp, ref_mlp, rtol=RTOL, atol=ATOL)

    # --- gcn (fused (A@x)@W+b per layer) --------------------------------------
    m_gcn = TopAgg(A_norm, 0.5, 3, emb_dim, hidden_dim, k3, linear_prop="gcn")
    out_gcn = jax.block_until_ready(m_gcn(x))
    ref_g = x
    for (W, b) in m_gcn.lins[:-1]:
        ref_g = jnp.maximum(
            jnp.dot(A_norm @ ref_g, W, preferred_element_type=jnp.float32) + b,
            0.0)
    Wl, bl = m_gcn.lins[-1]
    ref_g = jnp.dot(A_norm @ ref_g, Wl, preferred_element_type=jnp.float32) + bl
    assert out_gcn.shape == (node_num, emb_dim)
    assert jnp.allclose(out_gcn, ref_g, rtol=RTOL, atol=ATOL)

    print("KERNEL_OK")
</pallas_src>

<mosaic_0001>
module attributes {stable_mosaic.version = 11 : i64} {
  func.func @kernel(%arg0: i32, %arg1: i32, %arg2: memref<128x256xbf16, #tpu.memory_space<vmem>>, %arg3: memref<256x256xbf16, #tpu.memory_space<vmem>>, %arg4: memref<1x256xf32, #tpu.memory_space<vmem>>, %arg5: memref<128x256xf32, #tpu.memory_space<vmem>>, %arg6: memref<128x256xf32, #tpu.memory_space<vmem>>) attributes {dimension_semantics = [#tpu.dimension_semantics<parallel>, #tpu.dimension_semantics<arbitrary>], iteration_bounds = array<i64: 2, 1>, scalar_prefetch = 0 : i64, scratch_operands = 1 : i64, tpu.core_type = #tpu.core_type<tc>, window_params = [{transform_indices = @transform_0, window_bounds = array<i64: 128, 256>}, {transform_indices = @transform_1, window_bounds = array<i64: 256, 256>}, {pipeline_mode = #tpu.pipeline_mode<synchronous>, transform_indices = @transform_2, window_bounds = array<i64: 1, 256>}, {transform_indices = @transform_3, window_bounds = array<i64: 128, 256>}]} {
    %c0_i32 = arith.constant 0 : i32
    %0 = arith.cmpi eq, %arg1, %c0_i32 : i32
    %1 = arith.extui %0 : i1 to i32
    %c0_i32_0 = arith.constant 0 : i32
    %2 = arith.cmpi ne, %1, %c0_i32_0 : i32
    scf.if %2 {
      %cst_10 = arith.constant 0.000000e+00 : f32
      %12 = vector.broadcast %cst_10 : f32 to vector<128x256xf32>
      %c0_11 = arith.constant 0 : index
      %c0_12 = arith.constant 0 : index
      %13 = vector.load %arg6[%c0_11, %c0_12] : memref<128x256xf32, #tpu.memory_space<vmem>>, vector<128x256xf32>
      tpu.vector_store %arg6[%c0_11, %c0_12], %12 {strides = array<i32>} : memref<128x256xf32, #tpu.memory_space<vmem>>, vector<128x256xf32>,
    } else {
    }
    %c0 = arith.constant 0 : index
    %c0_1 = arith.constant 0 : index
    %3 = vector.load %arg6[%c0, %c0_1] : memref<128x256xf32, #tpu.memory_space<vmem>>, vector<128x256xf32>
    %c0_2 = arith.constant 0 : index
    %c0_3 = arith.constant 0 : index
    %4 = vector.load %arg2[%c0_2, %c0_3] : memref<128x256xbf16, #tpu.memory_space<vmem>>, vector<128x256xbf16>
    %c0_4 = arith.constant 0 : index
    %c0_5 = arith.constant 0 : index
    %5 = vector.load %arg3[%c0_4, %c0_5] : memref<256x256xbf16, #tpu.memory_space<vmem>>, vector<256x256xbf16>
    %cst = arith.constant dense<0.000000e+00> : vector<128x256xf32>
    %6 = tpu.matmul %4, %5, %cst {dimension_numbers = #tpu.dot_dimension_numbers<[1], [0], [0], [1], [0, 0, 1, 1], [], []>} : vector<128x256xbf16>, vector<256x256xbf16>, vector<128x256xf32> -> vector<128x256xf32>
    %7 = arith.addf %3, %6 : vector<128x256xf32>
    %c0_6 = arith.constant 0 : index
    %c0_7 = arith.constant 0 : index
    %8 = vector.load %arg6[%c0_6, %c0_7] : memref<128x256xf32, #tpu.memory_space<vmem>>, vector<128x256xf32>
    tpu.vector_store %arg6[%c0_6, %c0_7], %7 {strides = array<i32>} : memref<128x256xf32, #tpu.memory_space<vmem>>, vector<128x256xf32>,
    %c0_i32_8 = arith.constant 0 : i32
    %9 = arith.cmpi eq, %arg1, %c0_i32_8 : i32
    %10 = arith.extui %9 : i1 to i32
    %c0_i32_9 = arith.constant 0 : i32
    %11 = arith.cmpi ne, %10, %c0_i32_9 : i32
    scf.if %11 {
      %c0_10 = arith.constant 0 : index
      %c0_11 = arith.constant 0 : index
      %12 = vector.load %arg6[%c0_10, %c0_11] : memref<128x256xf32, #tpu.memory_space<vmem>>, vector<128x256xf32>
      %c0_12 = arith.constant 0 : index
      %c0_13 = arith.constant 0 : index
      %13 = vector.load %arg4[%c0_12, %c0_13] : memref<1x256xf32, #tpu.memory_space<vmem>>, vector<1x256xf32>
      %14 = vector.broadcast %13 : vector<1x256xf32> to vector<128x256xf32>
      %15 = arith.addf %12, %14 : vector<128x256xf32>
      %16 = arith.mulf %15, %15 : vector<128x256xf32>
      %cst_14 = arith.constant dense<0.000000e+00> : vector<128xf32>
      %17 = vector.multi_reduction <add>, %16, %cst_14 [1] : vector<128x256xf32> to vector<128xf32>
      %18 = vector.shape_cast %17 : vector<128xf32> to vector<128x1xf32>
      %cst_15 = arith.constant 1.000000e-24 : f32
      %19 = vector.broadcast %cst_15 : f32 to vector<128x1xf32>
      %20 = arith.maximumf %18, %19 : vector<128x1xf32>
      %21 = math.rsqrt %20 : vector<128x1xf32>
      %22 = vector.broadcast %21 : vector<128x1xf32> to vector<128x256xf32>
      %23 = arith.mulf %15, %22 : vector<128x256xf32>
      %c0_16 = arith.constant 0 : index
      %c0_17 = arith.constant 0 : index
      %24 = vector.load %arg5[%c0_16, %c0_17] : memref<128x256xf32, #tpu.memory_space<vmem>>, vector<128x256xf32>
      tpu.vector_store %arg5[%c0_16, %c0_17], %23 {strides = array<i32>} : memref<128x256xf32, #tpu.memory_space<vmem>>, vector<128x256xf32>,
    } else {
    }
    return
  }
  func.func @transform_0(%arg0: i32, %arg1: i32) -> (i32, i32) {
    %c0_i32 = arith.constant 0 : i32
    return %arg0, %arg1 : i32, i32
  }
  func.func @transform_1(%arg0: i32, %arg1: i32) -> (i32, i32) {
    %c0_i32 = arith.constant 0 : i32
    %c0_i32_0 = arith.constant 0 : i32
    return %arg1, %c0_i32 : i32, i32
  }
  func.func @transform_2(%arg0: i32, %arg1: i32) -> (i32, i32) {
    %c0_i32 = arith.constant 0 : i32
    %c0_i32_0 = arith.constant 0 : i32
    %c0_i32_1 = arith.constant 0 : i32
    return %c0_i32, %c0_i32_0 : i32, i32
  }
  func.func @transform_3(%arg0: i32, %arg1: i32) -> (i32, i32) {
    %c0_i32 = arith.constant 0 : i32
    %c0_i32_0 = arith.constant 0 : i32
    return %arg0, %c0_i32 : i32, i32
  }
}

</mosaic_0001>

<bundles_post_ra>
// kernel: tpu_custom_call.1
= control target key start
LH: loop header
LB: loop body
LE: loop exit
PB: predicated region body
PF: predicated region fallthrough
CT: control target
= control target key end

     0   :  { %8 = vsyncpa [#allocation4], 0  ;;  %s2024_s0 = inlined_call_operand.hbm [shape: bf16[256,256], index: 0, kind: input, shape index: {}]   ;;  %s2025_s1 = inlined_call_operand.hbm [shape: bf16[256,256], index: 1, kind: input, shape index: {}]   ;;  %s2026_s2 = inlined_call_operand.vmem [shape: f32[1,256], index: 2, kind: input, shape index: {}]   ;;  %s2027_s3 = inlined_call_operand.hbm [shape: f32[256,256], index: 3, kind: output, shape index: {}]  }
   0x1   :  { %10 = vsyncpa [#allocation4 + $0x1], 0 }
   0x2   :  { %11 = vsyncpa [#allocation7], 0 }
   0x3   :  { %12 = vsyncpa [#allocation5], 0 }
   0x4   :  { %14 = vsyncpa [#allocation5 + $0x1], 0  ;;  %s1584_s12 = smov 0   ;;  %s1586_s13 = smov 0  }
   0x5   :  { %s1588_s14 = smov 0   ;;  %s1590_s15 = smov 0  }
   0x6   :  { %s1592_s16 = smov 0   ;;  %s1594_s17 = smov 0  }
   0x7 LB: > { %s1133_s18 = sadd.s32 4294967295, %s1555_s17   ;;  %s1134_s19 = sadd.s32 4294967294, %s1555_s17   ;;  %s1555_s17 = sphi %s1594_s17, %s20_s17   ;;  %s1551_s16 = sphi %s1592_s16, %s2049_s16   ;;  %s1547_s15 = sphi %s1590_s15, %s2048_s15   ;;  %s1543_s14 = sphi %s1588_s14, %s2047_s14   ;;  %s1539_s13 = sphi %s1586_s13, %s2046_s13   ;;  %s1535_s12 = sphi %s1584_s12, %s2045_s12  }
   0x8   : > { %p54_p0 = scmp.ne.s32.totalorder %s1539_s13, %s1535_s12  ;;  %p1618_p1 = scmp.eq.s32.totalorder %s1133_s18, 0 }
   0x9   : > { %p1622_p2 = scmp.eq.s32.totalorder %s1133_s18, 1  ;;  %p131_p3 = scmp.eq.s32.totalorder %s1134_s19, 1 }
   0xa   : > { %p1628_p4 = por %p1618_p1, %p54_p0  ;;  %p1135_p5 = scmp.ge.s32.totalorder %s1555_s17, 1 }
   0xb   : > { %p1633_p6 = por %p131_p3, %p54_p0  ;;  %p138_p7 = scmp.lt.s32.totalorder %s1555_s17, 3 }
   0xc   : > { %s2033_s22 = scalar_select %p1628_p4, 1, 0 }
   0xd   : > { %s2034_s23 = scalar_select %p1633_p6, 1, 0 }
   0xe   : > { %p1638_p8 = pnand %p1135_p5, %p138_p7  ;;  %s1557_s25 = smov [#allocation6]  }
   0xf   : > { %s154_s26 = sshll.u32 %s1557_s25, 4  ;;  %s32_s28 = sadd.s32 1, %s1551_s16  ;;  %s155_s26 = int_to_ptr.vmem [resolvable:$true] %s154_s26 }
  0x10   : > { %p1244_p9 = pneg %p1638_p8  ;;  %s1428_s29 = scalar_lea.vmem %s155_s26, 4096 }
  0x11   : > { %p1429_p13 = scmp.ne.s32.totalorder %s155_s26, %s1428_s29  ;;  %p1436_p5 = scmp.lt.s32.totalorder %s155_s26, %s155_s26 }
  0x12   : > { %p1647_p11 = pnand %p1244_p9, %p1618_p1  ;;  %p1437_p7 = scmp.lt.s32.totalorder %s1428_s29, %s1428_s29 }
  0x14   : > { %p1419_p12 = pneg %p1647_p11  ;;  %p1438_p6 = por %p1437_p7, %p1436_p5 }
  0x16   : > { %p1431_p0 = pnand %p1429_p13, %p1419_p12 }
  0x18   : > { %p1432_p3 = pneg %p1431_p0 }
  0x1a   : > { %p1439_p4 = pnand %p1438_p6, %p1432_p3 }
  0x1c   : > { %1442 = shalt.err (!%p1439_p4)
}
  0x1d   : > { %s2029_s30 = smov 128   ;;  %s2030_s4 = smov 8  }
  0x1e   : > { %1247 = dma.hbm_to_vmem [thread:$0]  (!%p1647_p11), %s2025_s1, 4096, %s155_s26, [#allocation7], %s2029_s30, %s2029_s30, %s2030_s4  }
  0x1f   : > { %p34_p4 = scmp.ge.s32.totalorder %s32_s28, 2  ;;  %s41_s7 = sadd.s32 1, %s1543_s14 }
  0x20   : > { %p48_p6 = scmp.ne.s32.totalorder %s1543_s14, %s1539_s13  ;;  %p49_p9 = scmp.eq.s32.totalorder %s1555_s17, 0 }
  0x21   : > { %s2051_s28 = smov (%p34_p4, %s32_s28), 0  ;;  %p1257_p0 = scmp.lt.s32.totalorder %s1555_s17, 2 }
  0x22   : > { %p1668_p12 = por %p49_p9, %p48_p6  ;;  %p1674_p13 = por %p1622_p2, %p48_p6 }
  0x23   : > { %s36_s10 = ssub.s32 %s1551_s16, %s2051_s28  ;;  %s171_s11 = sand.u32 1, %s1543_s14  }
  0x24   : > { %p39_p11 = scmp.eq.s32.totalorder %s36_s10, 0  ;;  %s1138_s18 = sshll.u32 %s171_s11, 7 }
  0x25   : > { %s1201_s25 = sshll.u32 %s1551_s16, 11  ;;  %s175_s5 = scalar_lea.vmem [#allocation3], %s1138_s18 }
  0x26   : > { %s1683_s19 = scalar_select %p39_p11, %s1543_s14, %s41_s7  }
  0x27   : > { %s184_s29 = scalar_lea.hbm %s2024_s0, %s1201_s25  ;;  %s185_s6 = sshll.u32 %s175_s5, 4  ;;  %s186_s6 = int_to_ptr.vmem [resolvable:$true] %s185_s6 }
  0x28   : > { %p1691_p2 = pnand %p1257_p0, %p1668_p12  ;;  %s172_s30 = scalar_lea.sflag [#allocation4], %s171_s11 }
  0x29   : > { %s1456_s10 = scalar_lea.vmem %s186_s6, 2048  ;;  %s1560_s7 = smov [#allocation3]  }
  0x2a   : > { %p1445_p3 = pneg %p1691_p2  ;;  %p1457_p5 = scmp.ne.s32.totalorder %s186_s6, %s1456_s10 }
  0x2b   : > { %s1461_s4 = sshll.u32 %s1560_s7, 4  ;;  %s1462_s4 = int_to_ptr.vmem [resolvable:$false] %s1461_s4 }
  0x2c   : > { %p1459_p7 = pnand %p1457_p5, %p1445_p3  ;;  %s1463_s25 = scalar_lea.vmem %s1462_s4, 4096 }
  0x2d   : > { %p1464_p6 = scmp.lt.s32.totalorder %s186_s6, %s1462_s4  ;;  %p1465_p9 = scmp.lt.s32.totalorder %s1463_s25, %s1456_s10 }
  0x2e   : > { %p1460_p4 = pneg %p1459_p7 }
  0x2f   : > { %p1466_p11 = por %p1465_p9, %p1464_p6 }
  0x31   : > { %p1467_p10 = pnand %p1466_p11, %p1460_p4 }
  0x33   : > { %1470 = shalt.err (!%p1467_p10)
}
  0x34   : > { %s2040_s8 = smov 8   ;;  %s2041_s18 = smov 128  }
  0x35   : > { %1251 = dma.hbm_to_vmem [thread:$0]  (!%p1691_p2), %s184_s29, 2048, %s186_s6, %s172_s30, %s2041_s18, %s2041_s18, %s2040_s8  }
  0x36   : > { %197 = sbr.rel (%p1638_p8) target bundleno = 530 (0x212), region = 32  ;;  %s1705_s11 = sand.u32 (!%p1638_p8), 1, %s1539_s13  }
  0x37   : > { %s1143_s4 = sshll.u32 (!%p1638_p8), %s1705_s11, 7  ;;  %s200_s26 = scalar_lea.sflag (!%p1638_p8), [#allocation4], %s1705_s11 }
  0x38   : > { %s1709_s27 = scalar_lea.vmem (!%p1638_p8), [#allocation3], %s1143_s4  ;;  %p2042_p10 = scmp.ne.s32.totalorder (!%p1638_p8), %s2033_s22, 0 }
  0x3b   : > { %1522 = dma.done.wait (%p2042_p10), %s200_s26, 2048  }
  0x3c   : > { %1524 = vsyncadd (%p2042_p10), %s200_s26, 4294965248 }
  0x3d   : > { %1526 = dma.done.wait (%p1618_p1), [#allocation7], 4096  }
  0x3e   : > { %1528 = vsyncadd (%p1618_p1), [#allocation7], 4294963200  ;;  %v1313_v0 = vld [vmem:[#allocation6 + $0x74] ss:$8 sps:$4 sm:$0xff]   ;;  %v1315_v1 = vld [vmem:[#allocation6 + $0x70] ss:$8 sps:$4 sm:$0xff]   ;;  %v804_v48 = vlaneseq }
  0x3f   : > { %590 = vmatprep.subr.bf16.mxu0 %v1313_v0  ;;  %1204 = vmatprep.subr.bf16.mxu1 %v1313_v0  ;;  %v1316_v2 = vld [vmem:[#allocation6 + $0x64] ss:$8 sps:$4 sm:$0xff]   ;;  %v1318_v3 = vld [vmem:[#allocation6 + $0x60] ss:$8 sps:$4 sm:$0xff]   ;;  %v1319_v4 = vld [vmem:[#allocation6 + $0x54] ss:$8 sps:$4 sm:$0xff]  }
  0x40   : > { %591 = vmatpush1.bf16.msra.mxu0 %v1315_v1  ;;  %1220 = vmatpush1.bf16.msra.mxu1 %v1315_v1  ;;  %v1321_v5 = vld [vmem:[#allocation6 + $0x50] ss:$8 sps:$4 sm:$0xff]   ;;  %v1322_v6 = vld [vmem:[#allocation6 + $0x44] ss:$8 sps:$4 sm:$0xff]   ;;  %v1324_v7 = vld [vmem:[#allocation6 + $0x40] ss:$8 sps:$4 sm:$0xff]  }
  0x41   : > { %592 = vmatprep.subr.bf16.mxu0 %v1316_v2  ;;  %1205 = vmatprep.subr.bf16.mxu1 %v1316_v2  ;;  %v1325_v8 = vld [vmem:[#allocation6 + $0x34] ss:$8 sps:$4 sm:$0xff]   ;;  %v1327_v9 = vld [vmem:[#allocation6 + $0x30] ss:$8 sps:$4 sm:$0xff]   ;;  %v1328_v10 = vld [vmem:[#allocation6 + $0x24] ss:$8 sps:$4 sm:$0xff]  }
  0x42   : > { %v1330_v11 = vld [vmem:[#allocation6 + $0x20] ss:$8 sps:$4 sm:$0xff]   ;;  %v1331_v12 = vld [vmem:[#allocation6 + $0x14] ss:$8 sps:$4 sm:$0xff]   ;;  %v1363_v13 = vld [vmem:[%s1709_s27 + $0x4] ss:$8 sps:$4 sm:$0xff]  }
  0x43   : > { %v1333_v14 = vld [vmem:[#allocation6 + $0x10] ss:$8 sps:$4 sm:$0xff]   ;;  %v1366_v15 = vld [vmem:[%s1709_s27 + $0x44] ss:$8 sps:$4 sm:$0xff]   ;;  %622 = vmatprep.mubr.bf16.mxu0 %v1363_v13  ;;  %v1336_v17 = vld [vmem:[#allocation6] ss:$8 sps:$4 sm:$0xff]  }
  0x44   : > { %593 = vmatpush1.bf16.msra.mxu0 %v1318_v3  ;;  %1221 = vmatpush1.bf16.msra.mxu1 %v1318_v3  ;;  %v1334_v16 = vld [vmem:[#allocation6 + $0x4] ss:$8 sps:$4 sm:$0xff]   ;;  %v1337_v18 = vld [vmem:[#allocation6 + $0xf4] ss:$8 sps:$4 sm:$0xff]   ;;  %v1339_v19 = vld [vmem:[#allocation6 + $0xf0] ss:$8 sps:$4 sm:$0xff]  }
  0x45   : > { %594 = vmatprep.subr.bf16.mxu0 %v1319_v4  ;;  %1206 = vmatprep.subr.bf16.mxu1 %v1319_v4  ;;  %v1340_v20 = vld [vmem:[#allocation6 + $0xe4] ss:$8 sps:$4 sm:$0xff]   ;;  %v1342_v21 = vld [vmem:[#allocation6 + $0xe0] ss:$8 sps:$4 sm:$0xff]   ;;  %v1343_v22 = vld [vmem:[#allocation6 + $0xd4] ss:$8 sps:$4 sm:$0xff]  }
  0x46   : > { %662 = vmatprep.mubr.bf16.mxu1 %v1366_v15  ;;  %v1345_v23 = vld [vmem:[#allocation6 + $0xd0] ss:$8 sps:$4 sm:$0xff]   ;;  %v1346_v24 = vld [vmem:[#allocation6 + $0xc4] ss:$8 sps:$4 sm:$0xff]   ;;  %v1348_v25 = vld [vmem:[#allocation6 + $0xc0] ss:$8 sps:$4 sm:$0xff]  }
  0x47   : > { %v1349_v26 = vld [vmem:[#allocation6 + $0xb4] ss:$8 sps:$4 sm:$0xff]   ;;  %v1351_v27 = vld [vmem:[#allocation6 + $0xb0] ss:$8 sps:$4 sm:$0xff]   ;;  %v1352_v28 = vld [vmem:[#allocation6 + $0xa4] ss:$8 sps:$4 sm:$0xff]  }
  0x48   : > { %595 = vmatpush1.bf16.msra.mxu0 %v1321_v5  ;;  %1222 = vmatpush1.bf16.msra.mxu1 %v1321_v5  ;;  %v1354_v29 = vld [vmem:[#allocation6 + $0xa0] ss:$8 sps:$4 sm:$0xff]   ;;  %v1355_v30 = vld [vmem:[#allocation6 + $0x94] ss:$8 sps:$4 sm:$0xff]   ;;  %v1357_v31 = vld [vmem:[#allocation6 + $0x90] ss:$8 sps:$4 sm:$0xff]  }
  0x49   : > { %596 = vmatprep.subr.bf16.mxu0 %v1322_v6  ;;  %1207 = vmatprep.subr.bf16.mxu1 %v1322_v6  ;;  %v1358_v32 = vld [vmem:[#allocation6 + $0x84] ss:$8 sps:$4 sm:$0xff]   ;;  %v1360_v33 = vld [vmem:[#allocation6 + $0x80] ss:$8 sps:$4 sm:$0xff]   ;;  %v1367_v36 = vld [vmem:[%s1709_s27 + $0x14] ss:$8 sps:$4 sm:$0xff]  }
  0x4a   : > { %v1361_v34 = vld [vmem:[%s1709_s27] ss:$8 sps:$4 sm:$0xff]   ;;  %v1369_v37 = vld [vmem:[%s1709_s27 + $0x54] ss:$8 sps:$4 sm:$0xff]   ;;  %v1371_v38 = vld [vmem:[%s1709_s27 + $0x10] ss:$8 sps:$4 sm:$0xff]  }
  0x4b   : > { %v1364_v35 = vld [vmem:[%s1709_s27 + $0x40] ss:$8 sps:$4 sm:$0xff]   ;;  %v1372_v39 = vld [vmem:[%s1709_s27 + $0x50] ss:$8 sps:$4 sm:$0xff]   ;;  %v1373_v40 = vld [vmem:[%s1709_s27 + $0x24] ss:$8 sps:$4 sm:$0xff]  }
  0x4c   : > { %597 = vmatpush1.bf16.msra.mxu0 %v1324_v7  ;;  %1223 = vmatpush1.bf16.msra.mxu1 %v1324_v7  ;;  %v1375_v41 = vld [vmem:[%s1709_s27 + $0x64] ss:$8 sps:$4 sm:$0xff]   ;;  %v1377_v42 = vld [vmem:[%s1709_s27 + $0x20] ss:$8 sps:$4 sm:$0xff]   ;;  %v1379_v44 = vld [vmem:[%s1709_s27 + $0x34] ss:$8 sps:$4 sm:$0xff]  }
  0x4d   : > { %598 = vmatprep.subr.bf16.mxu0 %v1325_v8  ;;  %1208 = vmatprep.subr.bf16.mxu1 %v1325_v8  ;;  %v1378_v43 = vld [vmem:[%s1709_s27 + $0x60] ss:$8 sps:$4 sm:$0xff]   ;;  %v1381_v45 = vld [vmem:[%s1709_s27 + $0x74] ss:$8 sps:$4 sm:$0xff]   ;;  %v1383_v46 = vld [vmem:[%s1709_s27 + $0x30] ss:$8 sps:$4 sm:$0xff]  }
  0x4e   : > { %v1384_v47 = vld [vmem:[%s1709_s27 + $0x70] ss:$8 sps:$4 sm:$0xff]   ;;  %v805_v49 = vshrl.u32 %v804_v48, 7  ;;  %v802_v51 = vld [vmem:[%s2026_s2] sm:$0x3]  ;;  %s1145_s24 = sshll.u32 %s1705_s11, 8 }
  0x4f   : > { %s1905_s30 = scalar_lea.vmem [#allocation8], %s1145_s24  ;;  %s1203_s29 = sshll.u32 %s1547_s15, 12 }
  0x50   : > { %599 = vmatpush1.bf16.msra.mxu0 %v1327_v9  ;;  %1224 = vmatpush1.bf16.msra.mxu1 %v1327_v9  ;;  %v806_v50 = vsub.s32 0, %v805_v49  ;;  %v810_v52 = vsub.s32 1, %v805_v49  ;;  %s1037_s5 = sshll.u32 %s1905_s30, 4  ;;  %s1970_s10 = scalar_lea.hbm %s2027_s3, %s1203_s29  ;;  %s1972_s5 = int_to_ptr.vmem [resolvable:$true] %s1037_s5 }
  0x51   : > { %600 = vmatprep.subr.bf16.mxu0 %v1328_v10  ;;  %1209 = vmatprep.subr.bf16.mxu1 %v1328_v10  ;;  %s1023_s15 = scalar_lea.sflag [#allocation5], %s1705_s11  ;;  %s1471_s7 = scalar_lea.vmem %s1972_s5, 4096 }
  0x52   : > { %v1738_v53 = vrot.slane %v802_v51, %v806_v50  ;;  %v1740_v54 = vrot.slane %v802_v51, %v810_v52  ;;  %p1472_p1 = scmp.ne.s32.totalorder %s1972_s5, %s1471_s7  ;;  %s1561_s25 = smov [#allocation8]  }
  0x53   : > { %s1475_s8 = sshll.u32 %s1561_s25, 4  ;;  %s1476_s8 = int_to_ptr.vmem [resolvable:$false] %s1475_s8 }
  0x54   : > { %601 = vmatpush1.bf16.msra.mxu0 %v1330_v11  ;;  %1225 = vmatpush1.bf16.msra.mxu1 %v1330_v11  ;;  %p1473_p8 = pnand %p1472_p1, %p1674_p13  ;;  %s1477_s18 = scalar_lea.vmem %s1476_s8, 8192 }
  0x55   : > { %602 = vmatprep.subr.bf16.mxu0 %v1331_v12  ;;  %1210 = vmatprep.subr.bf16.mxu1 %v1331_v12  ;;  %p1478_p0 = scmp.lt.s32.totalorder %s1972_s5, %s1476_s8  ;;  %p1479_p2 = scmp.lt.s32.totalorder %s1477_s18, %s1471_s7 }
  0x56   : > { %p1474_p12 = pneg %p1473_p8 }
  0x57   : > { %p1480_p3 = por %p1479_p2, %p1478_p0 }
  0x58   : > { %603 = vmatpush1.bf16.msra.mxu0 %v1333_v14  ;;  %1226 = vmatpush1.bf16.msra.mxu1 %v1333_v14 }
  0x59   : > { %604 = vmatprep.subr.bf16.mxu0 %v1334_v16  ;;  %1211 = vmatprep.subr.bf16.mxu1 %v1334_v16  ;;  %p1481_p5 = pnand %p1480_p3, %p1474_p12 }
  0x5c   : > { %605 = vmatpush1.bf16.msra.mxu0 %v1336_v17  ;;  %1227 = vmatpush1.bf16.msra.mxu1 %v1336_v17 }
  0x5d   : > { %606 = vmatprep.subr.bf16.mxu0 %v1337_v18  ;;  %1212 = vmatprep.subr.bf16.mxu1 %v1337_v18 }
  0x60   : > { %607 = vmatpush2.bf16.msra.mxu0 %v1339_v19  ;;  %1228 = vmatpush2.bf16.msra.mxu1 %v1339_v19 }
  0x61   : > { %608 = vmatprep.subr.bf16.mxu0 %v1340_v20  ;;  %1213 = vmatprep.subr.bf16.mxu1 %v1340_v20 }
  0x64   : > { %609 = vmatpush2.bf16.msra.mxu0 %v1342_v21  ;;  %1229 = vmatpush2.bf16.msra.mxu1 %v1342_v21 }
  0x65   : > { %610 = vmatprep.subr.bf16.mxu0 %v1343_v22  ;;  %1214 = vmatprep.subr.bf16.mxu1 %v1343_v22 }
  0x68   : > { %611 = vmatpush2.bf16.msra.mxu0 %v1345_v23  ;;  %1230 = vmatpush2.bf16.msra.mxu1 %v1345_v23 }
  0x69   : > { %612 = vmatprep.subr.bf16.mxu0 %v1346_v24  ;;  %1215 = vmatprep.subr.bf16.mxu1 %v1346_v24 }
  0x6c   : > { %613 = vmatpush2.bf16.msra.mxu0 %v1348_v25  ;;  %1231 = vmatpush2.bf16.msra.mxu1 %v1348_v25 }
  0x6d   : > { %614 = vmatprep.subr.bf16.mxu0 %v1349_v26  ;;  %1216 = vmatprep.subr.bf16.mxu1 %v1349_v26 }
  0x70   : > { %615 = vmatpush2.bf16.msra.mxu0 %v1351_v27  ;;  %1232 = vmatpush2.bf16.msra.mxu1 %v1351_v27 }
  0x71   : > { %616 = vmatprep.subr.bf16.mxu0 %v1352_v28  ;;  %1217 = vmatprep.subr.bf16.mxu1 %v1352_v28 }
  0x74   : > { %617 = vmatpush2.bf16.msra.mxu0 %v1354_v29  ;;  %1233 = vmatpush2.bf16.msra.mxu1 %v1354_v29 }
  0x75   : > { %618 = vmatprep.subr.bf16.mxu0 %v1355_v30  ;;  %1218 = vmatprep.subr.bf16.mxu1 %v1355_v30 }
  0x78   : > { %619 = vmatpush2.bf16.msra.mxu0 %v1357_v31  ;;  %1234 = vmatpush2.bf16.msra.mxu1 %v1357_v31 }
  0x79   : > { %620 = vmatprep.subr.bf16.mxu0 %v1358_v32  ;;  %1219 = vmatprep.subr.bf16.mxu1 %v1358_v32 }
  0x7c   : > { %621 = vmatpush2.bf16.msra.mxu0 %v1360_v33  ;;  %1235 = vmatpush2.bf16.msra.mxu1 %v1360_v33 }
  0x7f   : > { %623 = vmatmul.mubr.bf16.vlgmr.msra.gmra.mxu0 %v1361_v34  ;;  %663 = vmatmul.mubr.bf16.vlgmr.msra.gmra.mxu1 %v1364_v35 }
  0x80   : > { %632 = vmatprep.mubr.bf16.mxu0 %v1367_v36  ;;  %672 = vmatprep.mubr.bf16.mxu1 %v1369_v37 }
  0x87   : > { %633 = vmatmul.mubr.bf16.gmra.mxu0 %v1371_v38  ;;  %673 = vmatmul.mubr.bf16.gmra.mxu1 %v1372_v39 }
  0x88   : > { %642 = vmatprep.mubr.bf16.mxu0 %v1373_v40  ;;  %682 = vmatprep.mubr.bf16.mxu1 %v1375_v41 }
  0x8f   : > { %643 = vmatmul.mubr.bf16.gmra.mxu0 %v1377_v42  ;;  %683 = vmatmul.mubr.bf16.gmra.mxu1 %v1378_v43 }
  0x90   : > { %652 = vmatprep.mubr.bf16.mxu0 %v1379_v44  ;;  %692 = vmatprep.mubr.bf16.mxu1 %v1381_v45 }
  0x97   : > { %653 = vmatmul.mubr.bf16.gmra.mxu0 %v1383_v46  ;;  %693 = vmatmul.mubr.bf16.gmra.mxu1 %v1384_v47 }
 0x13f   : > { %v624_v55 = vpop.f32.mrf.mxu0  ;;  %v664_v56 = vpop.f32.mrf.mxu1 }
 0x140   : > { %v1743_v57 = vadd.f32 %v1738_v53, %v624_v55  ;;  %v1752_v62 = vadd.f32 %v1738_v53, %v664_v56 }
 0x141   : > { %v626_v58 = vpop.f32.mrf.mxu0  ;;  %v666_v59 = vpop.f32.mrf.mxu1 }
 0x142   : > { %v1746_v60 = vadd.f32 %v1740_v54, %v626_v58  ;;  %v1749_v61 = vadd.f32 %v1740_v54, %v666_v59  ;;  %v846_v1 = vmul.f32 %v1743_v57, %v1743_v57  ;;  %v862_v10 = vmul.f32 %v1752_v62, %v1752_v62 }
 0x143   : > { %v628_v63 = vpop.f32.mrf.mxu0  ;;  %v668_v0 = vpop.f32.mrf.mxu1 }
 0x144   : > { %v847_v2 = vmul.f32 %v1746_v60, %v1746_v60  ;;  %v863_v3 = vmul.f32 %v1749_v61, %v1749_v61  ;;  %v1761_v4 = vadd.f32 %v1738_v53, %v668_v0  ;;  %v1772_v13 = vadd.f32 %v1738_v53, %v628_v63 }
 0x145   : > { %v630_v5 = vpop.f32.mrf.mxu0  ;;  %v670_v6 = vpop.f32.mrf.mxu1 }
 0x146   : > { %v1764_v7 = vadd.f32 %v1740_v54, %v630_v5  ;;  %v1767_v8 = vadd.f32 %v1740_v54, %v670_v6  ;;  %v878_v9 = vadd.f32 %v847_v2, %v846_v1  ;;  %v864_v18 = vmul.f32 %v1761_v4, %v1761_v4 }
 0x147   : > { %v634_v11 = vpop.f32.mrf.mxu0  ;;  %v674_v12 = vpop.f32.mrf.mxu1  ;;  %v902_v19 = vadd.f32 %v863_v3, %v862_v10  ;;  %v848_v27 = vmul.f32 %v1772_v13, %v1772_v13 }
 0x148   : > { %879 = vadd.xlane.f32.xlu0 %v878_v9  ;;  %v865_v14 = vmul.f32 %v1767_v8, %v1767_v8  ;;  %v1777_v15 = vadd.f32 %v1738_v53, %v634_v11  ;;  %v849_v20 = vmul.f32 %v1764_v7, %v1764_v7  ;;  %v1784_v21 = vadd.f32 %v1738_v53, %v674_v12 }
 0x149   : > { %v636_v16 = vpop.f32.mrf.mxu0  ;;  %v676_v17 = vpop.f32.mrf.mxu1 }
 0x14a   : > { %v1787_v22 = vadd.f32 %v1740_v54, %v636_v16  ;;  %v1790_v23 = vadd.f32 %v1740_v54, %v676_v17  ;;  %v905_v26 = vadd.f32 %v865_v14, %v864_v18  ;;  %v850_v29 = vmul.f32 %v1777_v15, %v1777_v15 }
 0x14b   : > { %v638_v24 = vpop.f32.mrf.mxu0  ;;  %v678_v25 = vpop.f32.mrf.mxu1  ;;  %v866_v33 = vmul.f32 %v1784_v21, %v1784_v21  ;;  %v881_v36 = vadd.f32 %v849_v20, %v848_v27 }
 0x14c   : > { %v851_v28 = vmul.f32 %v1787_v22, %v1787_v22  ;;  %903 = vadd.xlane.f32.xlu0 %v902_v19  ;;  %v1799_v30 = vadd.f32 %v1738_v53, %v638_v24  ;;  %906 = vadd.xlane.f32.xlu1 %v905_v26  ;;  %v867_v34 = vmul.f32 %v1790_v23, %v1790_v23 }
 0x14d   : > { %v640_v31 = vpop.f32.mrf.mxu0  ;;  %v680_v32 = vpop.f32.mrf.mxu1  ;;  %v1816_v43 = vadd.f32 %v1738_v53, %v678_v25 }
 0x14e   : > { %v1806_v35 = vadd.f32 %v1740_v54, %v640_v31  ;;  %v1809_v37 = vadd.f32 %v1740_v54, %v680_v32  ;;  %v884_v40 = vadd.f32 %v851_v28, %v850_v29  ;;  %v852_v42 = vmul.f32 %v1799_v30, %v1799_v30 }
 0x14f   : > { %v644_v38 = vpop.f32.mrf.mxu0  ;;  %v684_v39 = vpop.f32.mrf.mxu1  ;;  %v908_v49 = vadd.f32 %v867_v34, %v866_v33  ;;  %v868_v59 = vmul.f32 %v1816_v43, %v1816_v43 }
 0x150   : > { %v853_v41 = vmul.f32 %v1806_v35, %v1806_v35  ;;  %882 = vadd.xlane.f32.xlu0 %v881_v36  ;;  %v1819_v44 = vadd.f32 %v1738_v53, %v644_v38  ;;  %885 = vadd.xlane.f32.xlu1 %v884_v40  ;;  %v1822_v47 = vadd.f32 %v1738_v53, %v684_v39 }
 0x151   : > { %v646_v45 = vpop.f32.mrf.mxu0  ;;  %v686_v46 = vpop.f32.mrf.mxu1  ;;  %v869_v50 = vmul.f32 %v1809_v37, %v1809_v37 }
 0x152   : > { %v1825_v48 = vadd.f32 %v1740_v54, %v646_v45  ;;  %v1830_v51 = vadd.f32 %v1740_v54, %v686_v46  ;;  %v887_v56 = vadd.f32 %v853_v41, %v852_v42  ;;  %v854_v63 = vmul.f32 %v1819_v44, %v1819_v44 }
 0x153   : > { %v648_v52 = vpop.f32.mrf.mxu0  ;;  %v688_v55 = vpop.f32.mrf.mxu1  ;;  %v870_v3 = vmul.f32 %v1822_v47, %v1822_v47  ;;  %v911_v12 = vadd.f32 %v869_v50, %v868_v59 }
 0x154   : > { %v855_v58 = vmul.f32 %v1825_v48, %v1825_v48  ;;  %909 = vadd.xlane.f32.xlu0 %v908_v49  ;;  %v1839_v0 = vadd.f32 %v1738_v53, %v648_v52  ;;  %888 = vadd.xlane.f32.xlu1 %v887_v56  ;;  %v871_v6 = vmul.f32 %v1830_v51, %v1830_v51 }
 0x155   : > { %v650_v1 = vpop.f32.mrf.mxu0  ;;  %v690_v2 = vpop.f32.mrf.mxu1  ;;  %v1856_v18 = vadd.f32 %v1738_v53, %v688_v55 }
 0x156   : > { %v1844_v5 = vadd.f32 %v1740_v54, %v650_v1  ;;  %v1849_v9 = vadd.f32 %v1740_v54, %v690_v2  ;;  %v890_v14 = vadd.f32 %v855_v58, %v854_v63  ;;  %v856_v17 = vmul.f32 %v1839_v0, %v1839_v0 }
 0x157   : > { %v654_v10 = vpop.f32.mrf.mxu0  ;;  %v694_v11 = vpop.f32.mrf.mxu1  ;;  %v914_v32 = vadd.f32 %v871_v6, %v870_v3  ;;  %v872_v38 = vmul.f32 %v1856_v18, %v1856_v18 }
 0x158   : > { %v857_v16 = vmul.f32 %v1844_v5, %v1844_v5  ;;  %v1859_v19 = vadd.f32 %v1738_v53, %v654_v10  ;;  %912 = vadd.xlane.f32.xlu1 %v911_v12  ;;  %891 = vadd.xlane.f32.xlu0 %v890_v14  ;;  %v1862_v25 = vadd.f32 %v1738_v53, %v694_v11 }
 0x159   : > { %v656_v20 = vpop.f32.mrf.mxu0  ;;  %v696_v24 = vpop.f32.mrf.mxu1  ;;  %v873_v27 = vmul.f32 %v1849_v9, %v1849_v9 }
 0x15a   : > { %v1865_v26 = vadd.f32 %v1740_v54, %v656_v20  ;;  %v1870_v28 = vadd.f32 %v1740_v54, %v696_v24  ;;  %v893_v33 = vadd.f32 %v857_v16, %v856_v17  ;;  %v858_v39 = vmul.f32 %v1859_v19, %v1859_v19 }
 0x15b   : > { %v658_v29 = vpop.f32.mrf.mxu0  ;;  %v698_v31 = vpop.f32.mrf.mxu1  ;;  %v874_v42 = vmul.f32 %v1862_v25, %v1862_v25  ;;  %v917_v50 = vadd.f32 %v873_v27, %v872_v38 }
 0x15c   : > { %v859_v34 = vmul.f32 %v1865_v26, %v1865_v26  ;;  %v1875_v36 = vadd.f32 %v1738_v53, %v658_v29  ;;  %915 = vadd.xlane.f32.xlu0 %v914_v32  ;;  %894 = vadd.xlane.f32.xlu1 %v893_v33  ;;  %v875_v46 = vmul.f32 %v1870_v28, %v1870_v28 }
 0x15d   : > { %v660_v40 = vpop.f32.mrf.mxu0  ;;  %v700_v41 = vpop.f32.mrf.mxu1  ;;  %v1896_v58 = vadd.f32 %v1738_v53, %v698_v31 }
 0x15e   : > { %v1884_v45 = vadd.f32 %v1740_v54, %v660_v40  ;;  %v1889_v49 = vadd.f32 %v1740_v54, %v700_v41  ;;  %v896_v52 = vadd.f32 %v859_v34, %v858_v39  ;;  %v860_v55 = vmul.f32 %v1875_v36, %v1875_v36 }
 0x15f   : > { %v920_v1 = vadd.f32 %v875_v46, %v874_v42  ;;  %v876_v54 = vmul.f32 %v1896_v58, %v1896_v58 }
 0x160   : > { %v861_v56 = vmul.f32 %v1884_v45, %v1884_v45  ;;  %918 = vadd.xlane.f32.xlu1 %v917_v50  ;;  %897 = vadd.xlane.f32.xlu0 %v896_v52  ;;  %v877_v63 = vmul.f32 %v1889_v49, %v1889_v49 }
 0x162   : > { %v899_v59 = vadd.f32 %v861_v56, %v860_v55  ;;  %v923_v2 = vadd.f32 %v877_v63, %v876_v54 }
 0x164   : > { %921 = vadd.xlane.f32.xlu0 %v920_v1  ;;  %900 = vadd.xlane.f32.xlu1 %v899_v59 }
 0x168   : > { %924 = vadd.xlane.f32.xlu1 %v923_v2 }
 0x1d1   : > { %v880_v3 = vpop.xlane.xlu0 %879 }
 0x1d2   : > { %v926_v6 = vmax.f32 %v880_v3, 1e-24 }
 0x1d4   : > { %1385 = vrsqrt.f32 %v926_v6 }
 0x1d5   : > { %v904_v53 = vpop.xlane.xlu0 %903  ;;  %v907_v10 = vpop.xlane.xlu1 %906 }
 0x1d6   : > { %v934_v11 = vmax.f32 %v904_v53, 1e-24  ;;  %v935_v12 = vmax.f32 %v907_v10, 1e-24 }
 0x1d8   : > { %1387 = vrsqrt.f32 %v934_v11 }
 0x1d9   : > { %1389 = vrsqrt.f32 %v935_v12  ;;  %v883_v14 = vpop.xlane.xlu0 %882  ;;  %v886_v17 = vpop.xlane.xlu1 %885 }
 0x1da   : > { %v927_v16 = vmax.f32 %v883_v14, 1e-24  ;;  %v928_v20 = vmax.f32 %v886_v17, 1e-24 }
 0x1dc   : > { %1391 = vrsqrt.f32 %v927_v16 }
 0x1dd   : > { %1393 = vrsqrt.f32 %v928_v20  ;;  %v910_v24 = vpop.xlane.xlu0 %909  ;;  %v889_v29 = vpop.xlane.xlu1 %888 }
 0x1de   : > { %v936_v27 = vmax.f32 %v910_v24, 1e-24  ;;  %v929_v31 = vmax.f32 %v889_v29, 1e-24 }
 0x1e0   : > { %1395 = vrsqrt.f32 %v936_v27 }
 0x1e1   : > { %v1386_v32 = vpop.eup %1385  ;;  %1397 = vrsqrt.f32 %v929_v31  ;;  %v913_v38 = vpop.xlane.xlu1 %912 }
 0x1e2   : > { %v958_v33 = vmul.f32 %v1386_v32, %v1743_v57  ;;  %v959_v34 = vmul.f32 %v1386_v32, %v1746_v60  ;;  %v892_v39 = vpop.xlane.xlu0 %891  ;;  %v937_v40 = vmax.f32 %v913_v38, 1e-24 }
 0x1e3   : > { %v930_v41 = vmax.f32 %v892_v39, 1e-24 }
 0x1e4   : > { %990 = vst [vmem:[%s1905_s30] sm:$0xff] %v958_v33  ;;  %991 = vst [vmem:[%s1905_s30 + $0x8] sm:$0xff] %v959_v34  ;;  %1399 = vrsqrt.f32 %v937_v40 }
 0x1e5   : > { %v1388_v42 = vpop.eup %1387  ;;  %1401 = vrsqrt.f32 %v930_v41  ;;  %v895_v52 = vpop.xlane.xlu1 %894 }
 0x1e6   : > { %v1390_v46 = vpop.eup %1389  ;;  %v974_v57 = vmul.f32 %v1388_v42, %v1752_v62  ;;  %v975_v60 = vmul.f32 %v1388_v42, %v1749_v61  ;;  %v916_v50 = vpop.xlane.xlu0 %915  ;;  %v931_v63 = vmax.f32 %v895_v52, 1e-24 }
 0x1e7   : > { %v976_v55 = vmul.f32 %v1390_v46, %v1761_v4  ;;  %v977_v56 = vmul.f32 %v1390_v46, %v1767_v8  ;;  %v938_v59 = vmax.f32 %v916_v50, 1e-24 }
 0x1e8   : > { %1006 = vst [vmem:[%s1905_s30 + $0x80] sm:$0xff] %v974_v57  ;;  %1007 = vst [vmem:[%s1905_s30 + $0x88] sm:$0xff] %v975_v60 }
 0x1e9   : > { %v1392_v1 = vpop.eup %1391  ;;  %1008 = vst [vmem:[%s1905_s30 + $0x90] sm:$0xff] %v976_v55  ;;  %1009 = vst [vmem:[%s1905_s30 + $0x98] sm:$0xff] %v977_v56  ;;  %1403 = vrsqrt.f32 %v938_v59  ;;  %v919_v4 = vpop.xlane.xlu1 %918 }
 0x1ea   : > { %v1394_v61 = vpop.eup %1393  ;;  %v960_v62 = vmul.f32 %v1392_v1, %v1772_v13  ;;  %v961_v54 = vmul.f32 %v1392_v1, %v1764_v7  ;;  %1405 = vrsqrt.f32 %v931_v63  ;;  %v898_v8 = vpop.xlane.xlu0 %897  ;;  %v939_v6 = vmax.f32 %v919_v4, 1e-24 }
 0x1eb   : > { %v962_v2 = vmul.f32 %v1394_v61, %v1777_v15  ;;  %v963_v3 = vmul.f32 %v1394_v61, %v1787_v22  ;;  %v932_v53 = vmax.f32 %v898_v8, 1e-24 }
 0x1ec   : > { %992 = vst [vmem:[%s1905_s30 + $0x10] sm:$0xff] %v960_v62  ;;  %993 = vst [vmem:[%s1905_s30 + $0x18] sm:$0xff] %v961_v54  ;;  %1407 = vrsqrt.f32 %v939_v6 }
 0x1ed   : > { %v1396_v10 = vpop.eup %1395  ;;  %994 = vst [vmem:[%s1905_s30 + $0x20] sm:$0xff] %v962_v2  ;;  %995 = vst [vmem:[%s1905_s30 + $0x28] sm:$0xff] %v963_v3  ;;  %1409 = vrsqrt.f32 %v932_v53  ;;  %v901_v22 = vpop.xlane.xlu1 %900 }
 0x1ee   : > { %v1398_v7 = vpop.eup %1397  ;;  %v978_v13 = vmul.f32 %v1396_v10, %v1784_v21  ;;  %v979_v11 = vmul.f32 %v1396_v10, %v1790_v23  ;;  %v922_v15 = vpop.xlane.xlu0 %921  ;;  %v933_v17 = vmax.f32 %v901_v22, 1e-24 }
 0x1ef   : > { %v964_v12 = vmul.f32 %v1398_v7, %v1799_v30  ;;  %v965_v14 = vmul.f32 %v1398_v7, %v1806_v35  ;;  %v940_v16 = vmax.f32 %v922_v15, 1e-24 }
 0x1f0   : > { %1010 = vst [vmem:[%s1905_s30 + $0xa0] sm:$0xff] %v978_v13  ;;  %1011 = vst [vmem:[%s1905_s30 + $0xa8] sm:$0xff] %v979_v11 }
 0x1f1   : > { %996 = vst [vmem:[%s1905_s30 + $0x30] sm:$0xff] %v964_v12  ;;  %997 = vst [vmem:[%s1905_s30 + $0x38] sm:$0xff] %v965_v14  ;;  %1411 = vrsqrt.f32 %v940_v16  ;;  %v1400_v21 = vpop.eup %1399  ;;  %v925_v23 = vpop.xlane.xlu1 %924 }
 0x1f2   : > { %1413 = vrsqrt.f32 %v933_v17  ;;  %v1402_v20 = vpop.eup %1401  ;;  %v980_v24 = vmul.f32 %v1400_v21, %v1816_v43  ;;  %v981_v30 = vmul.f32 %v1400_v21, %v1809_v37  ;;  %v941_v35 = vmax.f32 %v925_v23, 1e-24 }
 0x1f3   : > { %v966_v27 = vmul.f32 %v1402_v20, %v1819_v44  ;;  %v967_v29 = vmul.f32 %v1402_v20, %v1825_v48 }
 0x1f4   : > { %1012 = vst [vmem:[%s1905_s30 + $0xb0] sm:$0xff] %v980_v24  ;;  %1013 = vst [vmem:[%s1905_s30 + $0xb8] sm:$0xff] %v981_v30  ;;  %1415 = vrsqrt.f32 %v941_v35 }
 0x1f5   : > { %998 = vst [vmem:[%s1905_s30 + $0x40] sm:$0xff] %v966_v27  ;;  %999 = vst [vmem:[%s1905_s30 + $0x48] sm:$0xff] %v967_v29 }
 0x1f6   : > { %v1404_v31 = vpop.eup %1403 }
 0x1f7   : > { %v1406_v32 = vpop.eup %1405  ;;  %v982_v43 = vmul.f32 %v1404_v31, %v1822_v47  ;;  %v983_v37 = vmul.f32 %v1404_v31, %v1830_v51 }
 0x1f8   : > { %v968_v44 = vmul.f32 %v1406_v32, %v1839_v0  ;;  %v969_v48 = vmul.f32 %v1406_v32, %v1844_v5 }
 0x1f9   : > { %1014 = vst [vmem:[%s1905_s30 + $0xc0] sm:$0xff] %v982_v43  ;;  %1015 = vst [vmem:[%s1905_s30 + $0xc8] sm:$0xff] %v983_v37  ;;  %v1408_v33 = vpop.eup %1407 }
 0x1fa   : > { %1000 = vst [vmem:[%s1905_s30 + $0x50] sm:$0xff] %v968_v44  ;;  %1001 = vst [vmem:[%s1905_s30 + $0x58] sm:$0xff] %v969_v48  ;;  %v1410_v34 = vpop.eup %1409  ;;  %v984_v38 = vmul.f32 %v1408_v33, %v1856_v18  ;;  %v985_v47 = vmul.f32 %v1408_v33, %v1849_v9 }
 0x1fb   : > { %v970_v51 = vmul.f32 %v1410_v34, %v1859_v19  ;;  %v971_v0 = vmul.f32 %v1410_v34, %v1865_v26 }
 0x1fc   : > { %1016 = vst [vmem:[%s1905_s30 + $0xd0] sm:$0xff] %v984_v38  ;;  %1017 = vst [vmem:[%s1905_s30 + $0xd8] sm:$0xff] %v985_v47 }
 0x1fd   : > { %1002 = vst [vmem:[%s1905_s30 + $0x60] sm:$0xff] %v970_v51  ;;  %1003 = vst [vmem:[%s1905_s30 + $0x68] sm:$0xff] %v971_v0 }
 0x1fe   : > { %v1412_v5 = vpop.eup %1411 }
 0x1ff   : > { %v1414_v39 = vpop.eup %1413  ;;  %v986_v40 = vmul.f32 %v1412_v5, %v1862_v25  ;;  %v987_v18 = vmul.f32 %v1412_v5, %v1870_v28 }
 0x200   : > { %v972_v9 = vmul.f32 %v1414_v39, %v1875_v36  ;;  %v973_v19 = vmul.f32 %v1414_v39, %v1884_v45 }
 0x201   : > { %1018 = vst [vmem:[%s1905_s30 + $0xe0] sm:$0xff] %v986_v40  ;;  %1019 = vst [vmem:[%s1905_s30 + $0xe8] sm:$0xff] %v987_v18  ;;  %v1416_v26 = vpop.eup %1415 }
 0x202   : > { %1004 = vst [vmem:[%s1905_s30 + $0x70] sm:$0xff] %v972_v9  ;;  %1005 = vst [vmem:[%s1905_s30 + $0x78] sm:$0xff] %v973_v19  ;;  %v988_v25 = vmul.f32 %v1416_v26, %v1896_v58  ;;  %v989_v28 = vmul.f32 %v1416_v26, %v1889_v49 }
 0x204   : > { %1020 = vst [vmem:[%s1905_s30 + $0xf0] sm:$0xff] %v988_v25  ;;  %1021 = vst [vmem:[%s1905_s30 + $0xf8] sm:$0xff] %v989_v28 }
 0x205   : > { %1484 = shalt.err (!%p1481_p5)
}
 0x206   : > { %s1485_s4 = scalar_lea.hbm %s1970_s10, 4096  ;;  %s1489_s20 = scalar_lea.hbm %s2027_s3, 8192 }
 0x207   : > { %p1486_p7 = scmp.ne.s32.totalorder %s1970_s10, %s1485_s4  ;;  %p1490_p9 = scmp.lt.s32.totalorder %s1970_s10, %s2027_s3 }
 0x208   : > { %p1491_p11 = scmp.lt.s32.totalorder %s1489_s20, %s1485_s4 }
 0x209   : > { %p1487_p4 = pnand %p1486_p7, %p1674_p13 }
 0x20a   : > { %p1492_p10 = por %p1491_p11, %p1490_p9 }
 0x20b   : > { %p1488_p6 = pneg %p1487_p4 }
 0x20d   : > { %p1493_p1 = pnand %p1492_p10, %p1488_p6 }
 0x20f   : > { %1496 = shalt.err (!%p1493_p1)
}
 0x210   : > { %s1562_s30 = smov 256   ;;  %s1563_s29 = smov 16  }
 0x211   : > { %1242 = dma.vmem_to_hbm [thread:$0]  (%p1674_p13), %s1972_s5, 4096, %s1970_s10, %s1023_s15, %s1562_s30, %s1562_s30, %s1563_s29  }
 0x212 PF: > { %s1052_s6 = sand.u32 1, %s1535_s12   ;;  %p2043_p8 = scmp.ne.s32.totalorder %s2034_s23, 0 }
 0x213   : > { %p2044_p12 = scmp.ge.s32.totalorder %s1555_s17, 2  ;;  %s1053_s21 = scalar_lea.sflag [#allocation5], %s1052_s6 }
 0x215   : > { %p1253_p0 = pnand %p2044_p12, %p2043_p8 }
 0x217   : > { %p1254_p2 = pneg %p1253_p0 }
 0x219   : > { %1530 = dma.done.wait (%p1254_p2), %s1053_s21, 4096  }
 0x21a   : > { %1532 = vsyncadd (%p1254_p2), %s1053_s21, 4294963200  ;;  %s20_s17 = sadd.s32 1, %s1555_s17   ;;  %s2045_s12 = smov %s1539_s13 }
 0x21b   : > { %p17_p3 = scmp.ge.s32.totalorder %s20_s17, 4   ;;  %s2046_s13 = smov %s1543_s14 }
 0x21c   : > { %s2047_s14 = smov %s1683_s19  ;;  %s2048_s15 = smov %s1551_s16 }
 0x21d   : > { %s2049_s16 = smov %s2051_s28  ;;  %19 = sbr.rel (!%p17_p3) target bundleno = 7 (0x7), region = 90 }
 0x222   :  { %1058 = vsyncpa [#allocation4], 1 }
 0x223   :  { %1060 = vsyncpa [#allocation4 + $0x1], 1 }
 0x224   :  { %1061 = vsyncpa [#allocation7], 1 }
 0x225   :  { %1062 = vsyncpa [#allocation5], 1 }
 0x226   :  { %1064 = vsyncpa [#allocation5 + $0x1], 1 }

</bundles_post_ra>
